<compile_context>
chip_gen: v7x
topology: tpu7x:2x2x1
jax: 0.10.0
libtpu: 0.0.40
codegen_flags: <defaults>
</compile_context>

<pallas_src>
import numpy as np
import jax
import jax.numpy as jnp
from jax.experimental import pallas as pl
from jax.experimental.pallas import tpu as pltpu

NUM_CLASSES = 1                      # as in Loss_dict.__init__
_PAD_BOX = np.array([0.5, 0.5, 1.0, 1.0], np.float32)   # non-degenerate pad box
_EPS = 1e-7


# ---------------------------------------------------------------------------
# Fused kernel: CE (2-class closed form) + L1 + GIoU, all normalized in-kernel.
# ---------------------------------------------------------------------------
def _fused_loss_kernel(scale_ref, z_ref, src_ref, tgt_ref, out_ref):
    """
    scale_ref : SMEM f32[2]     -> [1/(B*Q), 1/num_boxes]
    z_ref     : VMEM f32[1, Np] -> z_i = l_other - l_label  (pads = -1e9)
    src_ref   : VMEM f32[4, Mp] -> matched pred boxes  (cx, cy, w, h) per row
    tgt_ref   : VMEM f32[4, Mp] -> matched target boxes (pad cols: src == tgt)
    out_ref   : SMEM f32[3]     -> [loss_entropy, loss_bbox, loss_giou]
    """
    inv_n = scale_ref[0]
    inv_b = scale_ref[1]

    # ---- cross entropy: for C == 2, NLL = softplus(l_other - l_label) ----
    z = z_ref[...].astype(jnp.float32)
    softplus = jnp.maximum(z, 0.0) + jnp.log(1.0 + jnp.exp(-jnp.abs(z)))
    out_ref[0] = jnp.sum(softplus * inv_n)

    # ---- box losses (lane-dense rows) ----
    src = src_ref[...].astype(jnp.float32)        # [4, Mp]
    tgt = tgt_ref[...].astype(jnp.float32)

    out_ref[1] = jnp.sum(jnp.abs(src - tgt) * inv_b)          # L1 sum / num_boxes

    scx, scy, sw, sh = src[0:1, :], src[1:2, :], src[2:3, :], src[3:4, :]
    tcx, tcy, tw, th = tgt[0:1, :], tgt[1:2, :], tgt[2:3, :], tgt[3:4, :]

    sx1, sy1 = scx - 0.5 * sw, scy - 0.5 * sh
    sx2, sy2 = scx + 0.5 * sw, scy + 0.5 * sh
    tx1, ty1 = tcx - 0.5 * tw, tcy - 0.5 * th
    tx2, ty2 = tcx + 0.5 * tw, tcy + 0.5 * th

    area_s = (sx2 - sx1) * (sy2 - sy1)
    area_t = (tx2 - tx1) * (ty2 - ty1)

    iw = jnp.maximum(jnp.minimum(sx2, tx2) - jnp.maximum(sx1, tx1), 0.0)
    ih = jnp.maximum(jnp.minimum(sy2, ty2) - jnp.maximum(sy1, ty1), 0.0)
    inter = iw * ih
    union = jnp.maximum(area_s + area_t - inter, _EPS)

    ew = jnp.maximum(jnp.maximum(sx2, tx2) - jnp.minimum(sx1, tx1), 0.0)
    eh = jnp.maximum(jnp.maximum(sy2, ty2) - jnp.minimum(sy1, ty1), 0.0)
    enclose = jnp.maximum(ew * eh, _EPS)

    # EUP approximate reciprocal + one Newton step -> ~f32 accuracy, EUP slot.
    r_u = pl.reciprocal(union, approx=True)
    r_u = r_u * (2.0 - union * r_u)
    r_e = pl.reciprocal(enclose, approx=True)
    r_e = r_e * (2.0 - enclose * r_e)

    iou = inter * r_u
    giou = iou - (enclose - union) * r_e
    out_ref[2] = jnp.sum((1.0 - giou) * inv_b)


# ---------------------------------------------------------------------------
# Single jitted device function: gather/scatter the matched data, build the
# lane-dense slabs, and run the fused kernel.  One dispatch, one kernel launch.
# ---------------------------------------------------------------------------
@jax.jit
def _device_losses(pred_logits, pred_boxes, src_flat_idx, matched_labels,
                   valid, tgt_boxes_pad, inv_scales):
    B, Q, C = pred_logits.shape
    N = B * Q
    n_lane = ((N + 127) // 128) * 128

    logits = pred_logits.astype(jnp.float32).reshape(N, C)
    boxes = pred_boxes.astype(jnp.float32).reshape(N, 4)

    # Target classes: 0 (no-object) everywhere, matched queries get their label.
    # Pad entries carry an out-of-range index -> dropped by the scatter.
    tc = jnp.zeros((N,), jnp.int32).at[src_flat_idx].set(matched_labels, mode="drop")
    z = (logits[:, 1] - logits[:, 0]) * (1.0 - 2.0 * tc.astype(jnp.float32))
    z = jnp.pad(z, (0, n_lane - N), constant_values=-1e9).reshape(1, n_lane)

    # Matched source boxes (device gather). Pad rows copy the safe target pad box
    # so that src == tgt there -> exactly 0 contribution, no mask needed.
    gidx = jnp.minimum(src_flat_idx, N - 1)
    src = jnp.take(boxes, gidx, axis=0)
    src = jnp.where(valid[:, None], src, tgt_boxes_pad)

    out = pl.pallas_call(
        _fused_loss_kernel,
        out_shape=jax.ShapeDtypeStruct((3,), jnp.float32),
        in_specs=[
            pl.BlockSpec(memory_space=pltpu.MemorySpace.SMEM),   # inv scales
            pl.BlockSpec(memory_space=pltpu.MemorySpace.VMEM),   # z  [1, Np]
            pl.BlockSpec(memory_space=pltpu.MemorySpace.VMEM),   # src [4, Mp]
            pl.BlockSpec(memory_space=pltpu.MemorySpace.VMEM),   # tgt [4, Mp]
        ],
        out_specs=pl.BlockSpec(memory_space=pltpu.MemorySpace.SMEM),
    )(inv_scales.astype(jnp.float32), z, src.T,
      tgt_boxes_pad.astype(jnp.float32).T)
    return out[0], out[1], out[2]


# ---------------------------------------------------------------------------
# Glue: greedy deterministic matcher (stand-in for model.matcher / Hungarian).
# Operates purely on host NumPy copies (no device syncs inside).
# ---------------------------------------------------------------------------
def greedy_matcher(pred_logits_np, pred_boxes_np, targets_np):
    # TODO(synk): exact Hungarian matching (scipy.linear_sum_assignment) is a
    # sequential combinatorial algorithm with no clean Pallas equivalent; a
    # deterministic greedy matcher with the same cost terms is used as glue.
    logits = np.asarray(pred_logits_np, np.float32)
    m = logits.max(-1, keepdims=True)
    e = np.exp(logits - m)
    probs = e / e.sum(-1, keepdims=True)

    indices = []
    for b, t in enumerate(targets_np):
        tb = np.asarray(t["boxes"], np.float32)       # [Ni, 4]
        tl = np.asarray(t["labels"], np.int64)        # [Ni]
        pb = np.asarray(pred_boxes_np[b], np.float32) # [Q, 4]
        pp = probs[b]                                 # [Q, C]
        cost = np.abs(pb[:, None, :] - tb[None, :, :]).sum(-1) - pp[:, tl]
        used = set()
        src_idx, tgt_idx = [], []
        for j in range(tb.shape[0]):
            for q in np.argsort(cost[:, j], kind="stable"):
                if int(q) not in used:
                    used.add(int(q))
                    src_idx.append(int(q))
                    tgt_idx.append(j)
                    break
        indices.append((np.array(src_idx, np.int32), np.array(tgt_idx, np.int32)))
    return indices


# ---------------------------------------------------------------------------
# Loss_dict.forward
# ---------------------------------------------------------------------------
def loss_dict_forward(outputs, targets):
    pred_logits = outputs["pred_logits"]   # [B, Q, C] (device)
    pred_boxes = outputs["pred_boxes"]     # [B, Q, 4] (device)
    B, Q, C = pred_logits.shape
    assert C == NUM_CLASSES + 1 == 2, "closed-form CE kernel assumes 2 classes"

    # One blocking host transfer for the host-side matcher + target assembly.
    logits_h, boxes_h, targets_h = jax.device_get((pred_logits, pred_boxes, targets))
    logits_h = np.asarray(logits_h, np.float32)
    boxes_h = np.asarray(boxes_h, np.float32)

    indices = greedy_matcher(logits_h, boxes_h, targets_h)
    num_boxes = int(sum(np.asarray(t["labels"]).shape[0] for t in targets_h))

    # Flatten matched (batch, query) -> flat index, matched labels, target boxes.
    src_list, lab_list, box_list = [], [], []
    for b, (src, tgt) in enumerate(indices):
        src_list.append((b * Q + src).astype(np.int32))
        lab_list.append(np.asarray(targets_h[b]["labels"], np.int32)[tgt])
        box_list.append(np.asarray(targets_h[b]["boxes"], np.float32)[tgt])
    src_flat = np.concatenate(src_list).astype(np.int32)
    lab_flat = np.concatenate(lab_list).astype(np.int32)
    tgt_boxes = np.concatenate(box_list, axis=0).astype(np.float32)

    M = int(src_flat.shape[0])
    Mp = max(128, ((M + 127) // 128) * 128)          # lane-dense padding

    idx_p = np.full((Mp,), B * Q, np.int32)          # OOB marker -> scatter drops
    idx_p[:M] = src_flat
    lab_p = np.zeros((Mp,), np.int32)
    lab_p[:M] = lab_flat
    valid = np.zeros((Mp,), np.bool_)
    valid[:M] = True
    tgt_p = np.tile(_PAD_BOX, (Mp, 1)).astype(np.float32)
    tgt_p[:M] = tgt_boxes

    inv_scales = np.array([1.0 / (B * Q), 1.0 / num_boxes], np.float32)

    ce, l1, giou = _device_losses(
        pred_logits, pred_boxes,
        jnp.asarray(idx_p), jnp.asarray(lab_p), jnp.asarray(valid),
        jnp.asarray(tgt_p), jnp.asarray(inv_scales))

    return {"loss_labels": {"loss_entropy": ce},
            "loss_boxes": {"loss_bbox": l1, "loss_giou": giou}}


# ---------------------------------------------------------------------------
# Pure-NumPy reference (sanity check)
# ---------------------------------------------------------------------------
def _ref_losses_np(logits_2d, target_classes, src_boxes, tgt_boxes, num_boxes):
    m = logits_2d.max(-1, keepdims=True)
    lse = m + np.log(np.exp(logits_2d - m).sum(-1, keepdims=True))
    logp = logits_2d - lse
    nll = -np.take_along_axis(logp, target_classes[:, None].astype(np.int64), axis=-1)
    ce = float(nll.mean())

    def xyxy(b):
        cx, cy, w, h = b[:, 0], b[:, 1], b[:, 2], b[:, 3]
        return np.stack([cx - 0.5 * w, cy - 0.5 * h, cx + 0.5 * w, cy + 0.5 * h], -1)

    s, t = xyxy(src_boxes), xyxy(tgt_boxes)
    l1 = float(np.abs(src_boxes - tgt_boxes).sum() / num_boxes)
    area_s = (s[:, 2] - s[:, 0]) * (s[:, 3] - s[:, 1])
    area_t = (t[:, 2] - t[:, 0]) * (t[:, 3] - t[:, 1])
    iw = np.clip(np.minimum(s[:, 2], t[:, 2]) - np.maximum(s[:, 0], t[:, 0]), 0, None)
    ih = np.clip(np.minimum(s[:, 3], t[:, 3]) - np.maximum(s[:, 1], t[:, 1]), 0, None)
    inter = iw * ih
    union = area_s + area_t - inter
    iou = inter / union
    ew = np.clip(np.maximum(s[:, 2], t[:, 2]) - np.minimum(s[:, 0], t[:, 0]), 0, None)
    eh = np.clip(np.maximum(s[:, 3], t[:, 3]) - np.minimum(s[:, 1], t[:, 1]), 0, None)
    enc = ew * eh
    giou = iou - (enc - union) / enc
    return ce, l1, float((1.0 - giou).sum() / num_boxes)


if __name__ == "__main__":
    key = jax.random.PRNGKey(0)
    B, Q, C = 2, 8, NUM_CLASSES + 1
    k1, k2, k3, k4 = jax.random.split(key, 4)

    pred_logits = jax.random.normal(k1, (B, Q, C), dtype=jnp.float32)
    pred_boxes = jax.nn.sigmoid(jax.random.normal(k2, (B, Q, 4), dtype=jnp.float32))

    # synthetic targets: 3 boxes in image 0, 5 boxes in image 1 (num_boxes = 8)
    n_per_img = [3, 5]
    targets = []
    for i, n in enumerate(n_per_img):
        kb = jax.random.fold_in(k3, i)
        cxcy = 0.25 + 0.5 * jax.random.uniform(kb, (n, 2))
        wh = 0.1 + 0.2 * jax.random.uniform(jax.random.fold_in(k4, i), (n, 2))
        boxes = jnp.concatenate([cxcy, wh], axis=-1).astype(jnp.float32)
        labels = jnp.ones((n,), dtype=jnp.int32)   # object class = 1 (0 = no-object)
        targets.append({"boxes": boxes, "labels": labels})

    outputs = {"pred_logits": pred_logits, "pred_boxes": pred_boxes}

    losses = loss_dict_forward(outputs, targets)
    jax.block_until_ready(jax.tree_util.tree_leaves(losses))

    # ----- sanity check against a NumPy reference with the same matching -----
    logits_h, boxes_h, targets_h = jax.device_get((pred_logits, pred_boxes, targets))
    indices = greedy_matcher(logits_h, boxes_h, targets_h)
    tc = np.zeros((B, Q), np.int64)
    src_l, tgt_l = [], []
    for b, (src, tgt) in enumerate(indices):
        tc[b, src] = np.asarray(targets_h[b]["labels"])[tgt]
        src_l.append(np.asarray(boxes_h[b])[src])
        tgt_l.append(np.asarray(targets_h[b]["boxes"])[tgt])
    ce_r, l1_r, giou_r = _ref_losses_np(
        np.asarray(logits_h, np.float32).reshape(B * Q, C), tc.reshape(-1),
        np.concatenate(src_l, 0), np.concatenate(tgt_l, 0), sum(n_per_img))

    assert np.allclose(float(losses["loss_labels"]["loss_entropy"]), ce_r,
                       rtol=1e-4, atol=1e-5)
    assert np.allclose(float(losses["loss_boxes"]["loss_bbox"]), l1_r,
                       rtol=1e-4, atol=1e-5)
    assert np.allclose(float(losses["loss_boxes"]["loss_giou"]), giou_r,
                       rtol=1e-4, atol=1e-5)

    print("KERNEL_OK")
</pallas_src>

<mosaic_0001>
module attributes {stable_mosaic.version = 11 : i64} {
  func.func @_fused_loss_kernel(%arg0: memref<2xf32, #tpu.memory_space<smem>>, %arg1: memref<1x128xf32, #tpu.memory_space<vmem>>, %arg2: memref<4x128xf32, #tpu.memory_space<vmem>>, %arg3: memref<4x128xf32, #tpu.memory_space<vmem>>, %arg4: memref<3xf32, #tpu.memory_space<smem>>) attributes {dimension_semantics = [], scalar_prefetch = 0 : i64, scratch_operands = 0 : i64, tpu.core_type = #tpu.core_type<tc>} {
    %c0 = arith.constant 0 : index
    %0 = memref.load %arg0[%c0] : memref<2xf32, #tpu.memory_space<smem>>
    %c1 = arith.constant 1 : index
    %1 = memref.load %arg0[%c1] : memref<2xf32, #tpu.memory_space<smem>>
    %c0_0 = arith.constant 0 : index
    %c0_1 = arith.constant 0 : index
    %2 = vector.load %arg1[%c0_0, %c0_1] : memref<1x128xf32, #tpu.memory_space<vmem>>, vector<1x128xf32>
    %cst = arith.constant 0.000000e+00 : f32
    %3 = vector.broadcast %cst : f32 to vector<1x128xf32>
    %4 = arith.maximumf %2, %3 : vector<1x128xf32>
    %5 = math.absf %2 : vector<1x128xf32>
    %cst_2 = arith.constant 0.000000e+00 : f32
    %6 = vector.broadcast %cst_2 : f32 to vector<1x128xf32>
    %7 = arith.subf %6, %5 : vector<1x128xf32>
    %8 = math.exp %7 : vector<1x128xf32>
    %cst_3 = arith.constant 1.000000e+00 : f32
    %9 = vector.broadcast %cst_3 : f32 to vector<1x128xf32>
    %10 = arith.addf %9, %8 : vector<1x128xf32>
    %11 = math.log %10 : vector<1x128xf32>
    %12 = arith.addf %4, %11 : vector<1x128xf32>
    %13 = vector.broadcast %0 : f32 to vector<1x128xf32>
    %14 = arith.mulf %12, %13 : vector<1x128xf32>
    %15 = vector.shape_cast %14 : vector<1x128xf32> to vector<1x1x128xf32>
    %cst_4 = arith.constant dense<0.000000e+00> : vector<1xf32>
    %16 = vector.multi_reduction <add>, %15, %cst_4 [1, 2] : vector<1x1x128xf32> to vector<1xf32>
    %17 = vector.shape_cast %16 : vector<1xf32> to vector<1x1x1xf32>
    %18 = vector.extract %17[0, 0, 0] : f32 from vector<1x1x1xf32>
    %c0_5 = arith.constant 0 : index
    %19 = memref.load %arg4[%c0_5] : memref<3xf32, #tpu.memory_space<smem>>
    memref.store %18, %arg4[%c0_5] : memref<3xf32, #tpu.memory_space<smem>>
    %c0_6 = arith.constant 0 : index
    %c0_7 = arith.constant 0 : index
    %20 = vector.load %arg2[%c0_6, %c0_7] : memref<4x128xf32, #tpu.memory_space<vmem>>, vector<4x128xf32>
    %c0_8 = arith.constant 0 : index
    %c0_9 = arith.constant 0 : index
    %21 = vector.load %arg3[%c0_8, %c0_9] : memref<4x128xf32, #tpu.memory_space<vmem>>, vector<4x128xf32>
    %22 = arith.subf %20, %21 : vector<4x128xf32>
    %23 = math.absf %22 : vector<4x128xf32>
    %24 = vector.broadcast %1 : f32 to vector<4x128xf32>
    %25 = arith.mulf %23, %24 : vector<4x128xf32>
    %26 = vector.shape_cast %25 : vector<4x128xf32> to vector<1x4x128xf32>
    %cst_10 = arith.constant dense<0.000000e+00> : vector<1xf32>
    %27 = vector.multi_reduction <add>, %26, %cst_10 [1, 2] : vector<1x4x128xf32> to vector<1xf32>
    %28 = vector.shape_cast %27 : vector<1xf32> to vector<1x1x1xf32>
    %29 = vector.extract %28[0, 0, 0] : f32 from vector<1x1x1xf32>
    %c1_11 = arith.constant 1 : index
    %30 = memref.load %arg4[%c1_11] : memref<3xf32, #tpu.memory_space<smem>>
    memref.store %29, %arg4[%c1_11] : memref<3xf32, #tpu.memory_space<smem>>
    %31 = vector.extract_strided_slice %20 {offsets = [0, 0], sizes = [1, 128], strides = [1, 1]} : vector<4x128xf32> to vector<1x128xf32>
    %32 = vector.extract_strided_slice %20 {offsets = [1, 0], sizes = [1, 128], strides = [1, 1]} : vector<4x128xf32> to vector<1x128xf32>
    %33 = vector.extract_strided_slice %20 {offsets = [2, 0], sizes = [1, 128], strides = [1, 1]} : vector<4x128xf32> to vector<1x128xf32>
    %34 = vector.extract_strided_slice %20 {offsets = [3, 0], sizes = [1, 128], strides = [1, 1]} : vector<4x128xf32> to vector<1x128xf32>
    %35 = vector.extract_strided_slice %21 {offsets = [0, 0], sizes = [1, 128], strides = [1, 1]} : vector<4x128xf32> to vector<1x128xf32>
    %36 = vector.extract_strided_slice %21 {offsets = [1, 0], sizes = [1, 128], strides = [1, 1]} : vector<4x128xf32> to vector<1x128xf32>
    %37 = vector.extract_strided_slice %21 {offsets = [2, 0], sizes = [1, 128], strides = [1, 1]} : vector<4x128xf32> to vector<1x128xf32>
    %38 = vector.extract_strided_slice %21 {offsets = [3, 0], sizes = [1, 128], strides = [1, 1]} : vector<4x128xf32> to vector<1x128xf32>
    %cst_12 = arith.constant 5.000000e-01 : f32
    %39 = vector.broadcast %cst_12 : f32 to vector<1x128xf32>
    %40 = arith.mulf %39, %33 : vector<1x128xf32>
    %41 = arith.subf %31, %40 : vector<1x128xf32>
    %cst_13 = arith.constant 5.000000e-01 : f32
    %42 = vector.broadcast %cst_13 : f32 to vector<1x128xf32>
    %43 = arith.mulf %42, %34 : vector<1x128xf32>
    %44 = arith.subf %32, %43 : vector<1x128xf32>
    %cst_14 = arith.constant 5.000000e-01 : f32
    %45 = vector.broadcast %cst_14 : f32 to vector<1x128xf32>
    %46 = arith.mulf %45, %33 : vector<1x128xf32>
    %47 = arith.addf %31, %46 : vector<1x128xf32>
    %cst_15 = arith.constant 5.000000e-01 : f32
    %48 = vector.broadcast %cst_15 : f32 to vector<1x128xf32>
    %49 = arith.mulf %48, %34 : vector<1x128xf32>
    %50 = arith.addf %32, %49 : vector<1x128xf32>
    %cst_16 = arith.constant 5.000000e-01 : f32
    %51 = vector.broadcast %cst_16 : f32 to vector<1x128xf32>
    %52 = arith.mulf %51, %37 : vector<1x128xf32>
    %53 = arith.subf %35, %52 : vector<1x128xf32>
    %cst_17 = arith.constant 5.000000e-01 : f32
    %54 = vector.broadcast %cst_17 : f32 to vector<1x128xf32>
    %55 = arith.mulf %54, %38 : vector<1x128xf32>
    %56 = arith.subf %36, %55 : vector<1x128xf32>
    %cst_18 = arith.constant 5.000000e-01 : f32
    %57 = vector.broadcast %cst_18 : f32 to vector<1x128xf32>
    %58 = arith.mulf %57, %37 : vector<1x128xf32>
    %59 = arith.addf %35, %58 : vector<1x128xf32>
    %cst_19 = arith.constant 5.000000e-01 : f32
    %60 = vector.broadcast %cst_19 : f32 to vector<1x128xf32>
    %61 = arith.mulf %60, %38 : vector<1x128xf32>
    %62 = arith.addf %36, %61 : vector<1x128xf32>
    %63 = arith.subf %47, %41 : vector<1x128xf32>
    %64 = arith.subf %50, %44 : vector<1x128xf32>
    %65 = arith.mulf %63, %64 : vector<1x128xf32>
    %66 = arith.subf %59, %53 : vector<1x128xf32>
    %67 = arith.subf %62, %56 : vector<1x128xf32>
    %68 = arith.mulf %66, %67 : vector<1x128xf32>
    %69 = arith.minimumf %47, %59 : vector<1x128xf32>
    %70 = arith.maximumf %41, %53 : vector<1x128xf32>
    %71 = arith.subf %69, %70 : vector<1x128xf32>
    %cst_20 = arith.constant 0.000000e+00 : f32
    %72 = vector.broadcast %cst_20 : f32 to vector<1x128xf32>
    %73 = arith.maximumf %71, %72 : vector<1x128xf32>
    %74 = arith.minimumf %50, %62 : vector<1x128xf32>
    %75 = arith.maximumf %44, %56 : vector<1x128xf32>
    %76 = arith.subf %74, %75 : vector<1x128xf32>
    %cst_21 = arith.constant 0.000000e+00 : f32
    %77 = vector.broadcast %cst_21 : f32 to vector<1x128xf32>
    %78 = arith.maximumf %76, %77 : vector<1x128xf32>
    %79 = arith.mulf %73, %78 : vector<1x128xf32>
    %80 = arith.addf %65, %68 : vector<1x128xf32>
    %81 = arith.subf %80, %79 : vector<1x128xf32>
    %cst_22 = arith.constant 1.000000e-07 : f32
    %82 = vector.broadcast %cst_22 : f32 to vector<1x128xf32>
    %83 = arith.maximumf %81, %82 : vector<1x128xf32>
    %84 = arith.maximumf %47, %59 : vector<1x128xf32>
    %85 = arith.minimumf %41, %53 : vector<1x128xf32>
    %86 = arith.subf %84, %85 : vector<1x128xf32>
    %cst_23 = arith.constant 0.000000e+00 : f32
    %87 = vector.broadcast %cst_23 : f32 to vector<1x128xf32>
    %88 = arith.maximumf %86, %87 : vector<1x128xf32>
    %89 = arith.maximumf %50, %62 : vector<1x128xf32>
    %90 = arith.minimumf %44, %56 : vector<1x128xf32>
    %91 = arith.subf %89, %90 : vector<1x128xf32>
    %cst_24 = arith.constant 0.000000e+00 : f32
    %92 = vector.broadcast %cst_24 : f32 to vector<1x128xf32>
    %93 = arith.maximumf %91, %92 : vector<1x128xf32>
    %94 = arith.mulf %88, %93 : vector<1x128xf32>
    %cst_25 = arith.constant 1.000000e-07 : f32
    %95 = vector.broadcast %cst_25 : f32 to vector<1x128xf32>
    %96 = arith.maximumf %94, %95 : vector<1x128xf32>
    %97 = tpu.reciprocal %83 {approx = true} : vector<1x128xf32> -> vector<1x128xf32>
    %98 = arith.mulf %83, %97 : vector<1x128xf32>
    %cst_26 = arith.constant 2.000000e+00 : f32
    %99 = vector.broadcast %cst_26 : f32 to vector<1x128xf32>
    %100 = arith.subf %99, %98 : vector<1x128xf32>
    %101 = arith.mulf %97, %100 : vector<1x128xf32>
    %102 = tpu.reciprocal %96 {approx = true} : vector<1x128xf32> -> vector<1x128xf32>
    %103 = arith.mulf %96, %102 : vector<1x128xf32>
    %cst_27 = arith.constant 2.000000e+00 : f32
    %104 = vector.broadcast %cst_27 : f32 to vector<1x128xf32>
    %105 = arith.subf %104, %103 : vector<1x128xf32>
    %106 = arith.mulf %102, %105 : vector<1x128xf32>
    %107 = arith.mulf %79, %101 : vector<1x128xf32>
    %108 = arith.subf %96, %83 : vector<1x128xf32>
    %109 = arith.mulf %108, %106 : vector<1x128xf32>
    %110 = arith.subf %107, %109 : vector<1x128xf32>
    %cst_28 = arith.constant 1.000000e+00 : f32
    %111 = vector.broadcast %cst_28 : f32 to vector<1x128xf32>
    %112 = arith.subf %111, %110 : vector<1x128xf32>
    %113 = vector.broadcast %1 : f32 to vector<1x128xf32>
    %114 = arith.mulf %112, %113 : vector<1x128xf32>
    %115 = vector.shape_cast %114 : vector<1x128xf32> to vector<1x1x128xf32>
    %cst_29 = arith.constant dense<0.000000e+00> : vector<1xf32>
    %116 = vector.multi_reduction <add>, %115, %cst_29 [1, 2] : vector<1x1x128xf32> to vector<1xf32>
    %117 = vector.shape_cast %116 : vector<1xf32> to vector<1x1x1xf32>
    %118 = vector.extract %117[0, 0, 0] : f32 from vector<1x1x1xf32>
    %c2 = arith.constant 2 : index
    %119 = memref.load %arg4[%c2] : memref<3xf32, #tpu.memory_space<smem>>
    memref.store %118, %arg4[%c2] : memref<3xf32, #tpu.memory_space<smem>>
    return
  }
}

</mosaic_0001>

<bundles_post_ra>
// kernel: _device_losses.1
= control target key start
LH: loop header
LB: loop body
LE: loop exit
PB: predicated region body
PF: predicated region fallthrough
CT: control target
= control target key end

     0   :  { %9 = vsyncpa [#allocation3], 0  ;;  %s253_s0 = inlined_call_operand.vmem [shape: f32[2], index: 0, kind: input, shape index: {}]   ;;  %s254_s1 = inlined_call_operand.vmem [shape: f32[1,128], index: 1, kind: input, shape index: {}]   ;;  %s255_s2 = inlined_call_operand.vmem [shape: f32[4,128], index: 2, kind: input, shape index: {}]   ;;  %s256_s3 = inlined_call_operand.vmem [shape: f32[4,128], index: 3, kind: input, shape index: {}]   ;;  %s257_s4 = inlined_call_operand.vmem [shape: f32[3], index: 4, kind: output, shape index: {}]  }
   0x1   :  { %10 = vsyncpa [#allocation4], 0  ;;  %s17_s17 = sshll.u32 %s253_s0, 4  ;;  %s18_s17 = int_to_ptr.vmem [resolvable:$true] %s17_s17 }
   0x2   :  { %s178_s18 = scalar_lea.vmem %s18_s17, 16  ;;  %p183_p1 = scmp.lt.s32.totalorder %s18_s17, %s18_s17 }
   0x3   :  { %p179_p0 = scmp.ne.s32.totalorder %s18_s17, %s178_s18  ;;  %p184_p2 = scmp.lt.s32.totalorder %s178_s18, %s178_s18 }
   0x5   :  { %p185_p3 = por %p184_p2, %p183_p1 }
   0x7   :  { %p186_p4 = pnand %p185_p3, %p179_p0 }
   0x9   :  { %189 = shalt.err (!%p186_p4)
}
   0xa   :  { %s206_s19 = smov [#allocation2]  }
   0xb   :  { %20 = dma.vmem_to_smem %s18_s17, 16, %s206_s19, [#allocation3]  }
   0xc   :  { %202 = dma.done.wait [#allocation3], 16  }
   0xd   :  { %203 = vsyncadd [#allocation3], 4294967280 }
   0xe   :  { %30 = sfence }
   0xf   :  { %v33_v0 = vld [vmem:[%s254_s1] sm:$0x1]  ;;  %s31_s1 = sld [smem:[#allocation2]]  ;;  %vm45_vm0 = vcmask 1040384   ;;  %vm64_vm1 = vcmask 1043456   ;;  %s151_s28 = sshll.u32 %s257_s4, 4  ;;  %s152_s28 = int_to_ptr.vmem [resolvable:$true] %s151_s28 }
  0x10   :  { %v35_v1 = vand.u32 2147483647, %v33_v0  ;;  %v58_v2 = vld [vmem:[%s255_s2] sm:$0xf]  ;;  %s245_s2 = sld [smem:[#allocation2 + $0x1]]  ;;  %v34_v39 = vmax.f32 %v33_v0, 0.0  ;;  %p195_p6 = scmp.lt.s32.totalorder %s152_s28, %s152_s28 }
  0x11   :  { %v59_v3 = vld [vmem:[%s256_s3] sm:$0xf]  ;;  %v77_v5 = vmul.f32 0.5, %v58_v2  ;;  %s190_s30 = scalar_lea.vmem %s152_s28, 16 }
  0x12   :  { %v36_v4 = vsub.f32 0.0, %v35_v1  ;;  %v83_v6 = vmul.f32 0.5, %v59_v3  ;;  %v60_v38 = vsub.f32 %v58_v2, %v59_v3  ;;  %p191_p5 = scmp.ne.s32.totalorder %s152_s28, %s190_s30  ;;  %p196_p7 = scmp.lt.s32.totalorder %s190_s30, %s190_s30 }
  0x13   :  { %v79_v8 = vrot.slane %v77_v5, 2 }
  0x14   :  { %v37_v7 = vmul.f32 1.442695, %v36_v4  ;;  %v85_v9 = vrot.slane %v83_v6, 2  ;;  %v61_v42 = vand.u32 2147483647, %v60_v38  ;;  %p197_p8 = por %p196_p7, %p195_p6 }
  0x15   :  { %v81_v10 = vsub.f32 %v58_v2, %v79_v8  ;;  %v82_v11 = vadd.f32 %v79_v8, %v58_v2  ;;  %v43_v44 = vstv %s31_s1 }
  0x16   :  { %170 = vpow2.f32 %v37_v7  ;;  %v87_v12 = vsub.f32 %v59_v3, %v85_v9  ;;  %v88_v13 = vadd.f32 %v85_v9, %v59_v3  ;;  %v62_v45 = vstv %s245_s2  ;;  %p198_p9 = pnand %p197_p8, %p191_p5 }
  0x17   :  { %v89_v14 = vsub.f32 %v82_v11, %v81_v10  ;;  %v63_v50 = vmul.f32 %v62_v45, %v61_v42 }
  0x18   :  { %v110_v15 = vmax.f32 %v82_v11, %v88_v13  ;;  %v111_v16 = vmin.f32 %v81_v10, %v87_v12  ;;  %v94_v17 = vsub.f32 %v88_v13, %v87_v12  ;;  %v99_v19 = vmin.f32 %v82_v11, %v88_v13 }
  0x19   :  { %v91_v18 = vrot.slane %v89_v14, 1  ;;  %v100_v20 = vmax.f32 %v81_v10, %v87_v12  ;;  %v65_v57 = vsel %vm64_vm1, %v63_v50, 0.0 }
  0x1a   :  { %v96_v21 = vrot.slane %v94_v17, 1  ;;  %v112_v22 = vsub.f32 %v110_v15, %v111_v16 }
  0x1b   :  { %v93_v23 = vmul.f32 %v91_v18, %v89_v14  ;;  %v101_v24 = vsub.f32 %v99_v19, %v100_v20 }
  0x1c   :  { %v98_v25 = vmul.f32 %v96_v21, %v94_v17  ;;  %v113_v26 = vmax.f32 %v112_v22, 0.0 }
  0x1d   :  { %v102_v27 = vmax.f32 %v101_v24, 0.0 }
  0x1e   :  { %v115_v28 = vrot.slane %v113_v26, 1  ;;  %v107_v31 = vadd.f32 %v98_v25, %v93_v23 }
  0x1f   :  { %v104_v30 = vrot.slane %v102_v27, 1 }
  0x20   :  { %v171_v29 = vpop.eup %170  ;;  %v117_v33 = vmul.f32 %v115_v28, %v113_v26 }
  0x21   :  { %v39_v32 = vadd.f32 1.0, %v171_v29  ;;  %v106_v34 = vmul.f32 %v104_v30, %v102_v27 }
  0x22   :  { %v118_v35 = vmax.f32 %v117_v33, 1e-07 }
  0x23   :  { %172 = vlog2.f32 %v39_v32  ;;  %v108_v36 = vsub.f32 %v107_v31, %v106_v34 }
  0x24   :  { %174 = vrcp.f32 %v118_v35 }
  0x25   :  { %v109_v37 = vmax.f32 %v108_v36, 1e-07 }
  0x27   :  { %176 = vrcp.f32 %v109_v37  ;;  %v128_v53 = vsub.f32 %v118_v35, %v109_v37 }
  0x2d   :  { %v173_v40 = vpop.eup %172 }
  0x2e   :  { %v41_v41 = vmul.f32 0.6931472, %v173_v40  ;;  %v175_v43 = vpop.eup %174 }
  0x2f   :  { %v124_v47 = vmul.f32 %v175_v43, %v118_v35 }
  0x30   :  { %v42_v46 = vadd.f32 %v41_v41, %v34_v39 }
  0x31   :  { %v177_v48 = vpop.eup %176  ;;  %v125_v51 = vsub.f32 2.0, %v124_v47 }
  0x32   :  { %v44_v49 = vmul.f32 %v43_v44, %v42_v46  ;;  %v120_v52 = vmul.f32 %v177_v48, %v109_v37 }
  0x33   :  { %v126_v55 = vmul.f32 %v175_v43, %v125_v51 }
  0x34   :  { %v46_v54 = vsel %vm45_vm0, %v44_v49, 0.0  ;;  %v121_v56 = vsub.f32 2.0, %v120_v52 }
  0x35   :  { %47 = vadd.xlane.f32.xlu0 %v46_v54  ;;  %v129_v59 = vmul.f32 %v128_v53, %v126_v55 }
  0x36   :  { %v122_v58 = vmul.f32 %v177_v48, %v121_v56 }
  0x38   :  { %v127_v60 = vmul.f32 %v122_v58, %v106_v34 }
  0x39   :  { %66 = vadd.xlane.f32.xlu0 %v65_v57 }
  0x3a   :  { %v130_v61 = vsub.f32 %v127_v60, %v129_v59 }
  0x3c   :  { %v131_v62 = vsub.f32 1.0, %v130_v61 }
  0x3e   :  { %v132_v63 = vmul.f32 %v131_v62, %v62_v45 }
  0x40   :  { %v133_v0 = vsel %vm45_vm0, %v132_v63, 0.0 }
  0x41   :  { %134 = vadd.xlane.f32.xlu1 %v133_v0 }
  0xc2   :  { %v48_v1 = vpop.xlane.xlu0 %47 }
  0xc3   :  { %v49_v2 = vrot.slane %v48_v1, 4 }
  0xc5   :  { %v50_v3 = vadd.f32 %v49_v2, %v48_v1 }
  0xc6   :  { %v67_v4 = vpop.xlane.xlu0 %66 }
  0xc7   :  { %v51_v5 = vrot.slane %v50_v3, 2  ;;  %v68_v6 = vrot.slane %v67_v4, 4 }
  0xc9   :  { %v69_v7 = vadd.f32 %v68_v6, %v67_v4  ;;  %v52_v8 = vadd.f32 %v51_v5, %v50_v3 }
  0xcb   :  { %v70_v9 = vrot.slane %v69_v7, 2  ;;  %v53_v10 = vrot.slane %v52_v8, 1 }
  0xcd   :  { %v71_v11 = vadd.f32 %v70_v9, %v69_v7  ;;  %v54_v12 = vadd.f32 %v53_v10, %v52_v8 }
  0xce   :  { %v135_v13 = vpop.xlane.xlu1 %134 }
  0xcf   :  { %162 = vpush %v54_v12  ;;  %v72_v14 = vrot.slane %v71_v11, 1  ;;  %v136_v15 = vrot.slane %v135_v13, 4 }
  0xd1   :  { %v73_v16 = vadd.f32 %v72_v14, %v71_v11  ;;  %v137_v17 = vadd.f32 %v136_v15, %v135_v13 }
  0xd3   :  { %164 = vpush %v73_v16  ;;  %v138_v18 = vrot.slane %v137_v17, 2 }
  0xd5   :  { %v139_v19 = vadd.f32 %v138_v18, %v137_v17 }
  0xd7   :  { %v140_v20 = vrot.slane %v139_v19, 1 }
  0xd9   :  { %v141_v21 = vadd.f32 %v140_v20, %v139_v19 }
  0xdb   :  { %166 = vpush %v141_v21 }
 0x100   :  { %s163_s3 = spop %162 }
 0x101   :  { %57 = sst [smem:[#allocation5]] %s163_s3 }
 0x104   :  { %s165_s25 = spop %164 }
 0x105   :  { %76 = sst [smem:[#allocation5 + $0x1]] %s165_s25 }
 0x10c   :  { %s167_s29 = spop %166 }
 0x10d   :  { %144 = sst [smem:[#allocation5 + $0x2]] %s167_s29 }
 0x10e   :  { %201 = shalt.err (!%p198_p9)
}
 0x10f   :  { %s207_s5 = smov [#allocation5]  }
 0x110   :  { %154 = dma.smem_to_vmem %s207_s5, 16, %s152_s28, [#allocation4]  }
 0x111   :  { %204 = dma.done.wait [#allocation4], 16  }
 0x112   :  { %205 = vsyncadd [#allocation4], 4294967280 }
 0x113   :  { %158 = sfence }
 0x114   :  { %159 = vsyncpa [#allocation3], 1 }
 0x115   :  { %160 = vsyncpa [#allocation4], 1 }

</bundles_post_ra>
